<compile_context>
chip_gen: v6e
topology: v6e:2x2x1
jax: 0.10.0
libtpu: 0.0.40
codegen_flags: <defaults>
</compile_context>

<pallas_src>
import jax
import jax.numpy as jnp
from jax.experimental import pallas as pl
from jax.experimental.pallas import tpu as pltpu


def _seghead_vpu_kernel(w_ref, x_ref, o_ref):
    """VPU channel mix for tiny channel counts.

    w_ref: SMEM (C_out, C_in) f32 -- scalar-prefetched weights
    x_ref: VMEM (C_in, TILE_S)    -- lane-dense pixel slab (pixels in lanes)
    o_ref: VMEM (C_out, TILE_S)
    """
    c_out, c_in = w_ref.shape
    rows = []
    for o in range(c_out):
        # Re-load each x row per (o, c): VMEM reloads are cheap (3 vld/cycle)
        # and this avoids keeping C_in sublane-sparse slabs live across the
        # whole output loop (vreg spills land on the vld/vst slots).
        acc = w_ref[o, 0] * x_ref[0:1, :].astype(jnp.float32)
        for c in range(1, c_in):
            acc = acc + w_ref[o, c] * x_ref[c:c + 1, :].astype(jnp.float32)
        rows.append(acc)
    out = rows[0] if c_out == 1 else jnp.concatenate(rows, axis=0)
    # Single dense (C_out, TILE_S) store instead of C_out masked row stores.
    o_ref[...] = out.astype(o_ref.dtype)


def _seghead_mxu_kernel(w_ref, x_ref, o_ref):
    """MXU path: o = W @ X (pixels in lanes), f32 accumulation.

    w_ref: VMEM (C_out, C_in)   full weight (activation dtype), resident
    x_ref: VMEM (C_in, TILE_S)
    o_ref: VMEM (C_out, TILE_S)
    """
    o_ref[...] = jnp.dot(
        w_ref[...], x_ref[...], preferred_element_type=jnp.float32
    ).astype(o_ref.dtype)


def _round_down_128(n: int) -> int:
    return max(128, (n // 128) * 128)


def _round_up_128(n: int) -> int:
    return ((n + 127) // 128) * 128


def seghead_forward(
    x_nchw: jax.Array,
    weight_oihw: jax.Array,
    *,
    target_step_bytes: int = 8 << 20,   # ~8 MiB of HBM traffic per grid step
) -> jax.Array:
    """1x1 conv (no bias) == per-pixel channel mix, done in Pallas on NCHW."""
    B, C_in, H, W = x_nchw.shape
    C_out, C_in_w, kh, kw = weight_oihw.shape
    assert C_in_w == C_in, (C_in_w, C_in)
    assert kh == 1 and kw == 1, "only the kernel_size=1 (bias=False) path is lowered"

    S = H * W
    dtype_bytes = x_nchw.dtype.itemsize
    x_flat = x_nchw.reshape(B, C_in, S)  # free reshape; stays channel-major

    # ---- Per-generation VMEM budget (v5e/v6e: 128 MiB, v7x: 64 MiB). ----
    try:
        vmem_cap = int(pltpu.get_tpu_info().vmem_capacity_bytes)
    except Exception:
        vmem_cap = 64 * 1024 * 1024  # conservative (v7x) fallback
    vmem_limit = min((vmem_cap * 3) // 4, 96 * 1024 * 1024)
    vmem_budget = vmem_limit // 2  # headroom for weight block + compiler scratch

    # ---- Tile sizing: bytes-per-step target, capped by double-buffered VMEM.
    per_pixel_bytes = (C_in + C_out) * dtype_bytes
    t_hbm = target_step_bytes // per_pixel_bytes
    t_vmem = vmem_budget // (2 * per_pixel_bytes)  # x2: double-buffered blocks
    tile_s = _round_down_128(min(t_hbm, t_vmem))
    if tile_s >= S:
        tile_s = S  # whole image in one step (block == full array dims)

    grid = (B, pl.cdiv(S, tile_s))
    # v7x has 2 TensorCores: make sure there are >= 2 grid steps to shard.
    if grid[0] * grid[1] < 2 and S >= 256:
        tile_s = _round_up_128(-(-S // 2))
        grid = (B, pl.cdiv(S, tile_s))

    use_vpu = (C_in <= 8) and (C_out <= 8) and (x_nchw.dtype == jnp.float32)

    cost = pl.CostEstimate(
        flops=2 * B * S * C_in * C_out,
        transcendentals=0,
        bytes_accessed=(B * S * (C_in + C_out) + C_in * C_out) * dtype_bytes,
    )

    if use_vpu:
        # Tiny-channel path: weights in SMEM via scalar prefetch, VPU FMAs.
        w = weight_oihw.reshape(C_out, C_in).astype(jnp.float32)
        grid_spec = pltpu.PrefetchScalarGridSpec(
            num_scalar_prefetch=1,
            grid=grid,
            in_specs=[
                pl.BlockSpec((None, C_in, tile_s), lambda b, s, w_sref: (b, 0, s)),
            ],
            out_specs=pl.BlockSpec(
                (None, C_out, tile_s), lambda b, s, w_sref: (b, 0, s)
            ),
        )
        kernel = _seghead_vpu_kernel
    else:
        # MXU path: weight matches activation dtype (bf16xbf16 native on MXU),
        # f32 accumulation via preferred_element_type.
        w = weight_oihw.reshape(C_out, C_in).astype(x_nchw.dtype)
        grid_spec = pltpu.PrefetchScalarGridSpec(
            num_scalar_prefetch=0,
            grid=grid,
            in_specs=[
                pl.BlockSpec((C_out, C_in), lambda b, s: (0, 0)),
                pl.BlockSpec((None, C_in, tile_s), lambda b, s: (b, 0, s)),
            ],
            out_specs=pl.BlockSpec((None, C_out, tile_s), lambda b, s: (b, 0, s)),
        )
        kernel = _seghead_mxu_kernel

    out_flat = pl.pallas_call(
        kernel,
        out_shape=jax.ShapeDtypeStruct((B, C_out, S), x_nchw.dtype),
        grid_spec=grid_spec,
        compiler_params=pltpu.CompilerParams(
            dimension_semantics=("parallel", "parallel"),
            vmem_limit_bytes=int(vmem_limit),
        ),
        cost_estimate=cost,
    )(w, x_flat)

    return out_flat.reshape(B, C_out, H, W)


if __name__ == "__main__":
    # Small shapes consistent with the module: batch=2, in_channels=4,
    # out_channels=3, spatial=16x16.
    B, C_IN, C_OUT, HW = 2, 4, 3, 16

    key = jax.random.PRNGKey(0)
    kx, kw = jax.random.split(key)

    x = jax.random.normal(kx, (B, C_IN, HW, HW), dtype=jnp.float32)
    # nn.Conv2d(in, out, 1, bias=False) weight shape: (out, in, 1, 1).
    weight = jax.random.normal(kw, (C_OUT, C_IN, 1, 1), dtype=jnp.float32) * 0.1

    y = seghead_forward(x, weight)
    y = jax.block_until_ready(y)

    # Reference (plain JAX) check of the 1x1-conv semantics.
    y_ref = jnp.einsum("bchw,oc->bohw", x, weight.reshape(C_OUT, C_IN))
    assert y.shape == (B, C_OUT, HW, HW), y.shape
    assert jnp.allclose(y, y_ref, atol=1e-5, rtol=1e-5), float(
        jnp.max(jnp.abs(y - y_ref))
    )

    print("KERNEL_OK")
</pallas_src>

<mosaic_0001>
module attributes {stable_mosaic.version = 11 : i64} {
  func.func @_seghead_vpu_kernel(%arg0: i32, %arg1: i32, %arg2: memref<3x4xf32, #tpu.memory_space<smem>>, %arg3: memref<1x4x256xf32, #tpu.memory_space<vmem>>, %arg4: memref<1x3x256xf32, #tpu.memory_space<vmem>>) attributes {dimension_semantics = [#tpu.dimension_semantics<parallel>, #tpu.dimension_semantics<parallel>], iteration_bounds = array<i64: 2, 1>, scalar_prefetch = 1 : i64, scratch_operands = 0 : i64, tpu.core_type = #tpu.core_type<tc>, window_params = [{transform_indices = @transform_0, window_bounds = array<i64: 1, 4, 256>}, {transform_indices = @transform_1, window_bounds = array<i64: 1, 3, 256>}]} {
    %c0 = arith.constant 0 : index
    %c0_0 = arith.constant 0 : index
    %0 = memref.load %arg2[%c0, %c0_0] : memref<3x4xf32, #tpu.memory_space<smem>>
    %c0_1 = arith.constant 0 : index
    %c0_2 = arith.constant 0 : index
    %c0_3 = arith.constant 0 : index
    %1 = vector.load %arg3[%c0_1, %c0_2, %c0_3] : memref<1x4x256xf32, #tpu.memory_space<vmem>>, vector<1x1x256xf32>
    %2 = vector.shape_cast %1 : vector<1x1x256xf32> to vector<1x256xf32>
    %3 = vector.broadcast %0 : f32 to vector<1x256xf32>
    %4 = arith.mulf %3, %2 : vector<1x256xf32>
    %c0_4 = arith.constant 0 : index
    %c1 = arith.constant 1 : index
    %5 = memref.load %arg2[%c0_4, %c1] : memref<3x4xf32, #tpu.memory_space<smem>>
    %c0_5 = arith.constant 0 : index
    %c1_6 = arith.constant 1 : index
    %c0_7 = arith.constant 0 : index
    %6 = vector.load %arg3[%c0_5, %c1_6, %c0_7] : memref<1x4x256xf32, #tpu.memory_space<vmem>>, vector<1x1x256xf32>
    %7 = vector.shape_cast %6 : vector<1x1x256xf32> to vector<1x256xf32>
    %8 = vector.broadcast %5 : f32 to vector<1x256xf32>
    %9 = arith.mulf %8, %7 : vector<1x256xf32>
    %10 = arith.addf %4, %9 : vector<1x256xf32>
    %c0_8 = arith.constant 0 : index
    %c2 = arith.constant 2 : index
    %11 = memref.load %arg2[%c0_8, %c2] : memref<3x4xf32, #tpu.memory_space<smem>>
    %c0_9 = arith.constant 0 : index
    %c2_10 = arith.constant 2 : index
    %c0_11 = arith.constant 0 : index
    %12 = vector.load %arg3[%c0_9, %c2_10, %c0_11] : memref<1x4x256xf32, #tpu.memory_space<vmem>>, vector<1x1x256xf32>
    %13 = vector.shape_cast %12 : vector<1x1x256xf32> to vector<1x256xf32>
    %14 = vector.broadcast %11 : f32 to vector<1x256xf32>
    %15 = arith.mulf %14, %13 : vector<1x256xf32>
    %16 = arith.addf %10, %15 : vector<1x256xf32>
    %c0_12 = arith.constant 0 : index
    %c3 = arith.constant 3 : index
    %17 = memref.load %arg2[%c0_12, %c3] : memref<3x4xf32, #tpu.memory_space<smem>>
    %c0_13 = arith.constant 0 : index
    %c3_14 = arith.constant 3 : index
    %c0_15 = arith.constant 0 : index
    %18 = vector.load %arg3[%c0_13, %c3_14, %c0_15] : memref<1x4x256xf32, #tpu.memory_space<vmem>>, vector<1x1x256xf32>
    %19 = vector.shape_cast %18 : vector<1x1x256xf32> to vector<1x256xf32>
    %20 = vector.broadcast %17 : f32 to vector<1x256xf32>
    %21 = arith.mulf %20, %19 : vector<1x256xf32>
    %22 = arith.addf %16, %21 : vector<1x256xf32>
    %c1_16 = arith.constant 1 : index
    %c0_17 = arith.constant 0 : index
    %23 = memref.load %arg2[%c1_16, %c0_17] : memref<3x4xf32, #tpu.memory_space<smem>>
    %c0_18 = arith.constant 0 : index
    %c0_19 = arith.constant 0 : index
    %c0_20 = arith.constant 0 : index
    %24 = vector.load %arg3[%c0_18, %c0_19, %c0_20] : memref<1x4x256xf32, #tpu.memory_space<vmem>>, vector<1x1x256xf32>
    %25 = vector.shape_cast %24 : vector<1x1x256xf32> to vector<1x256xf32>
    %26 = vector.broadcast %23 : f32 to vector<1x256xf32>
    %27 = arith.mulf %26, %25 : vector<1x256xf32>
    %c1_21 = arith.constant 1 : index
    %c1_22 = arith.constant 1 : index
    %28 = memref.load %arg2[%c1_21, %c1_22] : memref<3x4xf32, #tpu.memory_space<smem>>
    %c0_23 = arith.constant 0 : index
    %c1_24 = arith.constant 1 : index
    %c0_25 = arith.constant 0 : index
    %29 = vector.load %arg3[%c0_23, %c1_24, %c0_25] : memref<1x4x256xf32, #tpu.memory_space<vmem>>, vector<1x1x256xf32>
    %30 = vector.shape_cast %29 : vector<1x1x256xf32> to vector<1x256xf32>
    %31 = vector.broadcast %28 : f32 to vector<1x256xf32>
    %32 = arith.mulf %31, %30 : vector<1x256xf32>
    %33 = arith.addf %27, %32 : vector<1x256xf32>
    %c1_26 = arith.constant 1 : index
    %c2_27 = arith.constant 2 : index
    %34 = memref.load %arg2[%c1_26, %c2_27] : memref<3x4xf32, #tpu.memory_space<smem>>
    %c0_28 = arith.constant 0 : index
    %c2_29 = arith.constant 2 : index
    %c0_30 = arith.constant 0 : index
    %35 = vector.load %arg3[%c0_28, %c2_29, %c0_30] : memref<1x4x256xf32, #tpu.memory_space<vmem>>, vector<1x1x256xf32>
    %36 = vector.shape_cast %35 : vector<1x1x256xf32> to vector<1x256xf32>
    %37 = vector.broadcast %34 : f32 to vector<1x256xf32>
    %38 = arith.mulf %37, %36 : vector<1x256xf32>
    %39 = arith.addf %33, %38 : vector<1x256xf32>
    %c1_31 = arith.constant 1 : index
    %c3_32 = arith.constant 3 : index
    %40 = memref.load %arg2[%c1_31, %c3_32] : memref<3x4xf32, #tpu.memory_space<smem>>
    %c0_33 = arith.constant 0 : index
    %c3_34 = arith.constant 3 : index
    %c0_35 = arith.constant 0 : index
    %41 = vector.load %arg3[%c0_33, %c3_34, %c0_35] : memref<1x4x256xf32, #tpu.memory_space<vmem>>, vector<1x1x256xf32>
    %42 = vector.shape_cast %41 : vector<1x1x256xf32> to vector<1x256xf32>
    %43 = vector.broadcast %40 : f32 to vector<1x256xf32>
    %44 = arith.mulf %43, %42 : vector<1x256xf32>
    %45 = arith.addf %39, %44 : vector<1x256xf32>
    %c2_36 = arith.constant 2 : index
    %c0_37 = arith.constant 0 : index
    %46 = memref.load %arg2[%c2_36, %c0_37] : memref<3x4xf32, #tpu.memory_space<smem>>
    %c0_38 = arith.constant 0 : index
    %c0_39 = arith.constant 0 : index
    %c0_40 = arith.constant 0 : index
    %47 = vector.load %arg3[%c0_38, %c0_39, %c0_40] : memref<1x4x256xf32, #tpu.memory_space<vmem>>, vector<1x1x256xf32>
    %48 = vector.shape_cast %47 : vector<1x1x256xf32> to vector<1x256xf32>
    %49 = vector.broadcast %46 : f32 to vector<1x256xf32>
    %50 = arith.mulf %49, %48 : vector<1x256xf32>
    %c2_41 = arith.constant 2 : index
    %c1_42 = arith.constant 1 : index
    %51 = memref.load %arg2[%c2_41, %c1_42] : memref<3x4xf32, #tpu.memory_space<smem>>
    %c0_43 = arith.constant 0 : index
    %c1_44 = arith.constant 1 : index
    %c0_45 = arith.constant 0 : index
    %52 = vector.load %arg3[%c0_43, %c1_44, %c0_45] : memref<1x4x256xf32, #tpu.memory_space<vmem>>, vector<1x1x256xf32>
    %53 = vector.shape_cast %52 : vector<1x1x256xf32> to vector<1x256xf32>
    %54 = vector.broadcast %51 : f32 to vector<1x256xf32>
    %55 = arith.mulf %54, %53 : vector<1x256xf32>
    %56 = arith.addf %50, %55 : vector<1x256xf32>
    %c2_46 = arith.constant 2 : index
    %c2_47 = arith.constant 2 : index
    %57 = memref.load %arg2[%c2_46, %c2_47] : memref<3x4xf32, #tpu.memory_space<smem>>
    %c0_48 = arith.constant 0 : index
    %c2_49 = arith.constant 2 : index
    %c0_50 = arith.constant 0 : index
    %58 = vector.load %arg3[%c0_48, %c2_49, %c0_50] : memref<1x4x256xf32, #tpu.memory_space<vmem>>, vector<1x1x256xf32>
    %59 = vector.shape_cast %58 : vector<1x1x256xf32> to vector<1x256xf32>
    %60 = vector.broadcast %57 : f32 to vector<1x256xf32>
    %61 = arith.mulf %60, %59 : vector<1x256xf32>
    %62 = arith.addf %56, %61 : vector<1x256xf32>
    %c2_51 = arith.constant 2 : index
    %c3_52 = arith.constant 3 : index
    %63 = memref.load %arg2[%c2_51, %c3_52] : memref<3x4xf32, #tpu.memory_space<smem>>
    %c0_53 = arith.constant 0 : index
    %c3_54 = arith.constant 3 : index
    %c0_55 = arith.constant 0 : index
    %64 = vector.load %arg3[%c0_53, %c3_54, %c0_55] : memref<1x4x256xf32, #tpu.memory_space<vmem>>, vector<1x1x256xf32>
    %65 = vector.shape_cast %64 : vector<1x1x256xf32> to vector<1x256xf32>
    %66 = vector.broadcast %63 : f32 to vector<1x256xf32>
    %67 = arith.mulf %66, %65 : vector<1x256xf32>
    %68 = arith.addf %62, %67 : vector<1x256xf32>
    %69 = tpu.concatenate %22, %45, %68 in 0 : vector<1x256xf32>, vector<1x256xf32>, vector<1x256xf32> -> vector<3x256xf32>
    %c0_56 = arith.constant 0 : index
    %c0_57 = arith.constant 0 : index
    %c0_58 = arith.constant 0 : index
    %70 = vector.load %arg4[%c0_56, %c0_57, %c0_58] : memref<1x3x256xf32, #tpu.memory_space<vmem>>, vector<1x3x256xf32>
    %71 = vector.shape_cast %70 : vector<1x3x256xf32> to vector<3x256xf32>
    %72 = vector.shape_cast %69 : vector<3x256xf32> to vector<1x3x256xf32>
    tpu.vector_store %arg4[%c0_56, %c0_57, %c0_58], %72 {strides = array<i32>} : memref<1x3x256xf32, #tpu.memory_space<vmem>>, vector<1x3x256xf32>,
    return
  }
  func.func @transform_0(%arg0: i32, %arg1: i32, %arg2: memref<3x4xf32, #tpu.memory_space<smem>>) -> (i32, i32, i32) {
    %c0_i32 = arith.constant 0 : i32
    %c0_i32_0 = arith.constant 0 : i32
    return %arg0, %c0_i32, %arg1 : i32, i32, i32
  }
  func.func @transform_1(%arg0: i32, %arg1: i32, %arg2: memref<3x4xf32, #tpu.memory_space<smem>>) -> (i32, i32, i32) {
    %c0_i32 = arith.constant 0 : i32
    %c0_i32_0 = arith.constant 0 : i32
    return %arg0, %c0_i32, %arg1 : i32, i32, i32
  }
}

</mosaic_0001>

<bundles_post_ra>
// kernel: tpu_custom_call.1
= control target key start
LH: loop header
LB: loop body
LE: loop exit
PB: predicated region body
PF: predicated region fallthrough
CT: control target
= control target key end

     0   :  { %s534_s9 = smov [#allocation3]   ;;  %s654_s0 = inlined_call_operand.hbm [shape: f32[3,4], index: 0, kind: input, shape index: {}]   ;;  %s655_s1 = inlined_call_operand.hbm [shape: f32[2,4,256], index: 1, kind: input, shape index: {}]   ;;  %s656_s2 = inlined_call_operand.vmem [shape: f32[2,3,256], index: 2, kind: output, shape index: {}]  }
   0x1   :  { %8 = dma.hbm_to_smem %s654_s0, 64, %s534_s9, [#allocation2] }
   0x2   :  { %504 = dma.done.wait [#allocation2], 64 }
   0x3   :  { %505 = vsyncadd [#allocation2], 4294967232 }
   0x4   :  { %10 = sfence }
   0x5   :  { %11 = vsyncpa [#allocation5], 0 }
   0x6   :  { %13 = vsyncpa [#allocation5 + $0x1], 0  ;;  %s554_s12 = smov 0   ;;  %s556_s13 = smov 0  }
   0x7   :  { %s558_s14 = smov 0   ;;  %s560_s15 = smov 0  }
   0x8   :  { %s562_s16 = smov 0   ;;  %s564_s17 = smov 0  }
   0x9 LB: > { %s359_s0 = sadd.s32 4294967295, %s532_s17   ;;  %s31_s18 = sadd.s32 1, %s528_s16  ;;  %s532_s17 = sphi %s564_s17, %s19_s17   ;;  %s528_s16 = sphi %s562_s16, %s664_s16   ;;  %s524_s15 = sphi %s560_s15, %s663_s15   ;;  %s520_s14 = sphi %s558_s14, %s662_s14   ;;  %s516_s13 = sphi %s556_s13, %s661_s13   ;;  %s512_s12 = sphi %s554_s12, %s660_s12  }
   0xa   : > { %p33_p0 = scmp.ge.s32.totalorder %s31_s18, 2  ;;  %s40_s19 = sadd.s32 1, %s520_s14 }
   0xb   : > { %p47_p1 = scmp.ne.s32.totalorder %s520_s14, %s516_s13  ;;  %p48_p2 = scmp.eq.s32.totalorder %s532_s17, 0 }
   0xc   : > { %s666_s18 = smov (%p33_p0, %s31_s18), 0  ;;  %p53_p4 = scmp.ne.s32.totalorder %s516_s13, %s512_s12 }
   0xd   : > { %p590_p3 = por %p48_p2, %p47_p1  ;;  %s35_s21 = ssub.s32 %s528_s16, %s666_s18 }
   0xe   : > { %p54_p5 = scmp.eq.s32.totalorder %s359_s0, 0  ;;  %p38_p6 = scmp.eq.s32.totalorder %s35_s21, 0 }
   0xf   : > { %p394_p8 = scmp.lt.s32.totalorder %s532_s17, 2  ;;  %s105_s24 = sand.u32 1, %s520_s14  }
  0x10   : > { %p597_p7 = por %p54_p5, %p53_p4  ;;  %s386_s25 = sshll.u32 %s528_s16, 7 }
  0x11   : > { %s603_s23 = scalar_select %p38_p6, %s520_s14, %s40_s19  }
  0x12   : > { %s363_s26 = sshll.u32 %s105_s24, 3  ;;  %s117_s29 = scalar_lea.hbm %s655_s1, %s386_s25 }
  0x13   : > { %s109_s30 = scalar_lea.vmem [#allocation4], %s363_s26  ;;  %p612_p9 = pnand %p394_p8, %p590_p3 }
  0x14   : > { %s119_s3 = sshll.u32 %s109_s30, 4  ;;  %p366_p10 = scmp.ge.s32.totalorder %s532_s17, 1  ;;  %s120_s3 = int_to_ptr.vmem [resolvable:$true] %s119_s3 }
  0x15   : > { %p124_p11 = scmp.lt.s32.totalorder %s532_s17, 3  ;;  %s106_s5 = scalar_lea.sflag [#allocation5], %s105_s24 }
  0x16   : > { %p454_p12 = pneg %p612_p9  ;;  %s465_s6 = scalar_lea.vmem %s120_s3, 128 }
  0x17   : > { %p466_p13 = scmp.ne.s32.totalorder %s120_s3, %s465_s6  ;;  %s535_s7 = smov [#allocation4]  }
  0x18   : > { %s470_s8 = sshll.u32 %s535_s7, 4  ;;  %s471_s8 = int_to_ptr.vmem [resolvable:$false] %s470_s8 }
  0x19   : > { %p468_p0 = pnand %p466_p13, %p454_p12  ;;  %s472_s9 = scalar_lea.vmem %s471_s8, 256 }
  0x1a   : > { %p473_p2 = scmp.lt.s32.totalorder %s120_s3, %s471_s8  ;;  %p474_p3 = scmp.lt.s32.totalorder %s472_s9, %s465_s6 }
  0x1b   : > { %p469_p1 = pneg %p468_p0 }
  0x1c   : > { %p475_p4 = por %p474_p3, %p473_p2 }
  0x1e   : > { %p476_p5 = pnand %p475_p4, %p469_p1 }
  0x20   : > { %479 = shalt.err (!%p476_p5)
}
  0x21   : > { %393 = dma.hbm_to_vmem [thread:$0]  (!%p612_p9), %s117_s29, 128, %s120_s3, %s106_s5  }
  0x22   : > { %p125_p6 = pnand %p366_p10, %p124_p11 }
  0x23   : > { %s130_s10 = sand.u32 (!%p125_p6), 1, %s516_s13  }
  0x24   : > { %128 = sbr.rel (%p125_p6) target bundleno = 72 (0x48), region = 24  ;;  %s367_s11 = sshll.u32 (!%p125_p6), %s130_s10, 3 }
  0x25   : > { %s131_s12 = scalar_lea.sflag (!%p125_p6), [#allocation5], %s130_s10  ;;  %s134_s0 = scalar_lea.vmem (!%p125_p6), [#allocation4], %s367_s11 }
  0x29   : > { %507 = dma.done.wait (%p597_p7), %s131_s12, 128  }
  0x2a   : > { %509 = vsyncadd (%p597_p7), %s131_s12, 4294967168  ;;  %s168_s19 = sld [smem:[#allocation3]]  ;;  %v169_v0 = vld [vmem:[%s134_s0] ss:$4 sm:$0x3]  ;;  %v221_v8 = vlaneseq  ;;  %p159_p7 = scmp.lt.s32.totalorder %s524_s15, 1 }
  0x2b   : > { %s370_s20 = sld [smem:[#allocation3 + $0x1]]  ;;  %v371_v2 = vld [vmem:[%s134_s0 + $0x1] ss:$4 sm:$0x3]  ;;  %vm253_vm0 = vcmask 1040384   ;;  %vm256_vm1 = vcmask 1041408  }
  0x2c   : > { %s372_s21 = sld [smem:[#allocation3 + $0x2]]  ;;  %v373_v4 = vld [vmem:[%s134_s0 + $0x2] ss:$4 sm:$0x3]  ;;  %v222_v15 = vshrl.u32 %v221_v8, 7  ;;  %s668_s15 = smov (!%p159_p7, %s524_s15), 1 }
  0x2d   : > { %s374_s24 = sld [smem:[#allocation3 + $0x3]]  ;;  %v375_v11 = vld [vmem:[%s134_s0 + $0x3] ss:$4 sm:$0x3]  ;;  %s387_s4 = sshll.u32 %s668_s15, 3 }
  0x2e   : > { %s376_s25 = sld [smem:[#allocation3 + $0x80]]  ;;  %v223_v26 = vsub.s32 0, %v222_v15  ;;  %v227_v30 = vsub.s32 1, %v222_v15  ;;  %s166_s7 = scalar_lea.vmem %s656_s2, %s387_s4 }
  0x2f   : > { %s377_s26 = sld [smem:[#allocation3 + $0x81]] }
  0x30   : > { %v170_v1 = vstv %s168_s19  ;;  %s378_s27 = sld [smem:[#allocation3 + $0x82]] }
  0x31   : > { %v171_v3 = vmul.f32 %v170_v1, %v169_v0  ;;  %v175_v5 = vstv %s370_s20  ;;  %s379_s28 = sld [smem:[#allocation3 + $0x83]] }
  0x32   : > { %v176_v6 = vmul.f32 %v371_v2, %v175_v5  ;;  %v181_v7 = vstv %s372_s21  ;;  %s380_s22 = sld [smem:[#allocation3 + $0x100]] }
  0x33   : > { %v182_v9 = vmul.f32 %v373_v4, %v181_v7  ;;  %v187_v12 = vstv %s374_s24  ;;  %s381_s29 = sld [smem:[#allocation3 + $0x101]] }
  0x34   : > { %v177_v10 = vadd.f32 %v176_v6, %v171_v3  ;;  %v191_v13 = vstv %s376_s25  ;;  %s382_s30 = sld [smem:[#allocation3 + $0x102]]  ;;  %v188_v17 = vmul.f32 %v375_v11, %v187_v12 }
  0x35   : > { %v192_v14 = vmul.f32 %v191_v13, %v169_v0  ;;  %v194_v18 = vstv %s377_s26  ;;  %s383_s3 = sld [smem:[#allocation3 + $0x103]] }
  0x36   : > { %v183_v16 = vadd.f32 %v182_v9, %v177_v10  ;;  %v195_v19 = vmul.f32 %v371_v2, %v194_v18  ;;  %v198_v20 = vstv %s378_s27 }
  0x37   : > { %v199_v21 = vmul.f32 %v373_v4, %v198_v20  ;;  %v202_v22 = vstv %s379_s28 }
  0x38   : > { %v196_v23 = vadd.f32 %v195_v19, %v192_v14  ;;  %v203_v24 = vmul.f32 %v375_v11, %v202_v22  ;;  %v206_v25 = vstv %s380_s22  ;;  %v189_v27 = vadd.f32 %v188_v17, %v183_v16 }
  0x39   : > { %v207_v28 = vmul.f32 %v206_v25, %v169_v0  ;;  %v209_v29 = vstv %s381_s29 }
  0x3a   : > { %v200_v31 = vadd.f32 %v199_v21, %v196_v23  ;;  %v210_v32 = vmul.f32 %v371_v2, %v209_v29  ;;  %v213_v33 = vstv %s382_s30  ;;  %v224_v39 = vrot.slane %v189_v27, %v223_v26 }
  0x3b   : > { %v214_v34 = vmul.f32 %v373_v4, %v213_v33  ;;  %v217_v35 = vstv %s383_s3  ;;  %v228_v40 = vrot.slane %v189_v27, %v227_v30 }
  0x3c   : > { %v204_v36 = vadd.f32 %v203_v24, %v200_v31  ;;  %v211_v37 = vadd.f32 %v210_v32, %v207_v28  ;;  %v218_v38 = vmul.f32 %v375_v11, %v217_v35 }
  0x3e   : > { %v215_v41 = vadd.f32 %v214_v34, %v211_v37  ;;  %v235_v42 = vrot.slane %v204_v36, %v223_v26  ;;  %v239_v43 = vrot.slane %v204_v36, %v227_v30 }
  0x40   : > { %v219_v44 = vadd.f32 %v218_v38, %v215_v41  ;;  %v254_v45 = vsel %vm253_vm0, %v224_v39, %v235_v42  ;;  %v255_v46 = vsel %vm253_vm0, %v228_v40, %v239_v43 }
  0x42   : > { %v246_v47 = vrot.slane %v219_v44, %v223_v26  ;;  %v250_v48 = vrot.slane %v219_v44, %v227_v30 }
  0x44   : > { %v257_v49 = vsel %vm256_vm1, %v254_v45, %v246_v47  ;;  %v258_v50 = vsel %vm256_vm1, %v255_v46, %v250_v48 }
  0x45   : > { %v261_v51 = vcombine.low %v257_v49, %v258_v50 }
  0x47   : > { %263 = vst [vmem:[%s166_s7] sm:$0x77] %v261_v51 }
  0x48 PF: > { %s19_s17 = sadd.s32 1, %s532_s17   ;;  %s660_s12 = smov %s516_s13 }
  0x49   : > { %p16_p8 = scmp.ge.s32.totalorder %s19_s17, 4   ;;  %s661_s13 = smov %s520_s14 }
  0x4a   : > { %s662_s14 = smov %s603_s23  ;;  %s663_s15 = smov %s528_s16 }
  0x4b   : > { %s664_s16 = smov %s666_s18  ;;  %18 = sbr.rel (!%p16_p8) target bundleno = 9 (0x9), region = 67 }
  0x50   :  { %294 = vsyncpa [#allocation5], 1 }
  0x51   :  { %296 = vsyncpa [#allocation5 + $0x1], 1 }

</bundles_post_ra>
